<compile_context>
chip_gen: v6e
topology: v6e:2x2x1
jax: 0.10.0
libtpu: 0.0.40
codegen_flags: <defaults>
</compile_context>

<pallas_src>
import math

import jax
import jax.numpy as jnp
from jax.experimental import pallas as pl
from jax.experimental.pallas import tpu as pltpu


_LANES = 128


def _round_up(v: int, m: int) -> int:
    return ((v + m - 1) // m) * m


def _target_input_bytes() -> int:
    """Per-generation target size of one (n_chunk, R, 128) input block."""
    kind = ""
    try:
        kind = jax.devices()[0].device_kind.lower()
    except Exception:
        pass
    if "v5 lite" in kind or "v5lite" in kind or "v5e" in kind:
        return 4 * 1024 * 1024   # ~0.82 TB/s HBM: step already ~4 us, modest tiles
    if "v6" in kind:
        return 6 * 1024 * 1024   # ~1.4 TB/s HBM, 128 MiB VMEM
    if "v7" in kind:
        return 8 * 1024 * 1024   # ~3.2 TB/s HBM: amortize 0.35 us/step; 64 MiB VMEM
    return 6 * 1024 * 1024       # unknown chip: conservative default


def _max_reduce_kernel(x_ref, o_ref):
    """x_ref: (n_chunk, R, 128) input block; o_ref: (R, 128) resident output tile.

    The output tile is the running-max accumulator across the n-chunk grid
    axis (axis 1, marked "arbitrary"); it is initialized on the first chunk.
    """
    n_idx = pl.program_id(1)

    # Unrolled running max over the agents of this chunk: keeps live values to
    # ~one output tile instead of n_chunk tiles (avoids vreg/VMEM spill with
    # large blocks).
    nc = x_ref.shape[0]
    acc = x_ref[0]
    for i in range(1, nc):
        acc = jnp.maximum(acc, x_ref[i])

    @pl.when(n_idx == 0)
    def _():
        o_ref[...] = acc

    @pl.when(n_idx > 0)
    def _():
        o_ref[...] = jnp.maximum(o_ref[...], acc)


def _max_fusion_pallas(x3: jax.Array, target_bytes=None) -> jax.Array:
    """Reduce x3[(N, M128, 128)] over axis 0 -> (M128, 128)."""
    n, m128, lanes = x3.shape
    assert lanes == _LANES
    itemsize = jnp.dtype(x3.dtype).itemsize

    # Dtype-aware sublane granularity: f32 -> 8, bf16 -> 16, int8/fp8 -> 32,
    # so packed rows stay dense and stores remain unmasked.
    sub_mult = max(8, (8 * 4) // itemsize)

    if target_bytes is None:
        target_bytes = _target_input_bytes()
    target_bytes = int(target_bytes)

    # Split the reduction axis only if even a minimum-height tile would blow
    # the per-block budget (keeps each DMA large instead of shrinking R).
    n_cap = max(1, target_bytes // (sub_mult * _LANES * itemsize))
    if n <= n_cap:
        n_chunks, n_chunk = 1, n
    else:
        n_chunks = pl.cdiv(n, n_cap)
        n_chunk = pl.cdiv(n, n_chunks)
        pad_n = n_chunks * n_chunk - n
        if pad_n:
            # Repeat the last agent row: idempotent under max, dtype-agnostic.
            x3 = jnp.pad(x3, ((0, pad_n), (0, 0), (0, 0)), mode="edge")
        n = n_chunks * n_chunk

    # Rows (sublane extent) of each tile: as large as the budget allows, but
    # leave at least 2 grid steps along M so v7x's two TensorCores both work.
    rows = target_bytes // (n_chunk * _LANES * itemsize)
    rows = max(sub_mult, (rows // sub_mult) * sub_mult)
    if m128 >= 2 * sub_mult:
        rows = min(rows, _round_up(pl.cdiv(m128, 2), sub_mult))
    rows = min(rows, _round_up(m128, sub_mult))

    num_m_tiles = pl.cdiv(m128, rows)

    # VMEM limit from the real (dense, double-buffered) block footprint.
    in_block_bytes = n_chunk * rows * _LANES * itemsize
    out_block_bytes = rows * _LANES * itemsize
    vmem_limit = 2 * (in_block_bytes + out_block_bytes) + 8 * 1024 * 1024
    vmem_limit = int(min(max(vmem_limit, 16 * 1024 * 1024), 56 * 1024 * 1024))

    cost = pl.CostEstimate(
        flops=n * m128 * _LANES,                              # n-1 compares/elem ~ n
        transcendentals=0,
        bytes_accessed=(n + 1) * m128 * _LANES * itemsize,    # read stack + write out
    )

    return pl.pallas_call(
        _max_reduce_kernel,
        out_shape=jax.ShapeDtypeStruct((m128, _LANES), x3.dtype),
        grid_spec=pltpu.PrefetchScalarGridSpec(
            num_scalar_prefetch=0,
            grid=(num_m_tiles, n_chunks),
            in_specs=[
                pl.BlockSpec((n_chunk, rows, _LANES), lambda i, j: (j, i, 0)),
            ],
            # Same output block across the n-chunk axis -> resident accumulator.
            out_specs=pl.BlockSpec((rows, _LANES), lambda i, j: (i, 0)),
        ),
        compiler_params=pltpu.CompilerParams(
            dimension_semantics=("parallel", "arbitrary"),
            vmem_limit_bytes=vmem_limit,
        ),
        cost_estimate=cost,
    )(x3)


def max_fusion(x: jax.Array, *, use_pallas=None, target_block_bytes=None) -> jax.Array:
    """Pallas equivalent of MaxFusion.forward: max over dim 0 of (N, ...)."""
    n = x.shape[0]
    out_shape = x.shape[1:]
    m = math.prod(out_shape) if out_shape else 1

    if use_pallas is None:
        # Kernel-launch + per-step overhead dominates tiny problems.
        use_pallas = (n * m) >= (1 << 16)

    if (not use_pallas) or n <= 1 or m == 0:
        return jnp.max(x, axis=0)

    # Flatten; pad the feature dim to a multiple of 128 so the 3-D lane-dense
    # layout (N, M/128, 128) is exact.  Padded lanes only produce outputs that
    # are sliced off below.
    x2 = x.reshape(n, m)
    m_pad = _round_up(m, _LANES)
    if m_pad != m:
        x2 = jnp.pad(x2, ((0, 0), (0, m_pad - m)))
    x3 = x2.reshape(n, m_pad // _LANES, _LANES)

    out3 = _max_fusion_pallas(x3, target_bytes=target_block_bytes)

    out_flat = out3.reshape(m_pad)
    if m_pad != m:
        out_flat = out_flat[:m]
    return out_flat.reshape(out_shape)


if __name__ == "__main__":
    # Small shapes consistent with the module's forward: a stack of N agent
    # feature maps in NCHW.
    N, C, H, W = 2, 4, 16, 16
    key = jax.random.PRNGKey(0)
    x = jax.random.normal(key, (N, C, H, W), dtype=jnp.float32)

    # Force the Pallas path so the kernel is exercised even at this tiny size.
    out = jax.block_until_ready(max_fusion(x, use_pallas=True))
    ref = jnp.max(x, axis=0)
    assert out.shape == (C, H, W), out.shape
    assert jnp.allclose(out, ref), "Pallas max-fusion mismatch vs reference"

    # Lane-misaligned feature size exercises the pad-to-128 + slice path.
    x_odd = jax.random.normal(jax.random.PRNGKey(1), (3, 5, 7, 9), dtype=jnp.float32)
    out_odd = jax.block_until_ready(max_fusion(x_odd, use_pallas=True))
    assert out_odd.shape == (5, 7, 9)
    assert jnp.allclose(out_odd, jnp.max(x_odd, axis=0)), "Padded-path mismatch"

    # Auto-dispatch path (falls back to jnp.max for tiny inputs) must agree too.
    out_auto = jax.block_until_ready(max_fusion(x))
    assert jnp.allclose(out_auto, ref), "Dispatch path mismatch vs reference"

    print("KERNEL_OK")
</pallas_src>

<mosaic_0001>
module attributes {stable_mosaic.version = 11 : i64} {
  func.func @_max_reduce_kernel(%arg0: i32, %arg1: i32, %arg2: memref<2x8x128xf32, #tpu.memory_space<vmem>>, %arg3: memref<8x128xf32, #tpu.memory_space<vmem>>) attributes {dimension_semantics = [#tpu.dimension_semantics<parallel>, #tpu.dimension_semantics<arbitrary>], iteration_bounds = array<i64: 1, 1>, scalar_prefetch = 0 : i64, scratch_operands = 0 : i64, tpu.core_type = #tpu.core_type<tc>, window_params = [{transform_indices = @transform_0, window_bounds = array<i64: 2, 8, 128>}, {transform_indices = @transform_1, window_bounds = array<i64: 8, 128>}]} {
    %c0 = arith.constant 0 : index
    %c0_0 = arith.constant 0 : index
    %c0_1 = arith.constant 0 : index
    %0 = vector.load %arg2[%c0, %c0_0, %c0_1] : memref<2x8x128xf32, #tpu.memory_space<vmem>>, vector<1x8x128xf32>
    %1 = vector.shape_cast %0 : vector<1x8x128xf32> to vector<8x128xf32>
    %c1 = arith.constant 1 : index
    %c0_2 = arith.constant 0 : index
    %c0_3 = arith.constant 0 : index
    %2 = vector.load %arg2[%c1, %c0_2, %c0_3] : memref<2x8x128xf32, #tpu.memory_space<vmem>>, vector<1x8x128xf32>
    %3 = vector.shape_cast %2 : vector<1x8x128xf32> to vector<8x128xf32>
    %4 = arith.maximumf %1, %3 : vector<8x128xf32>
    %c0_i32 = arith.constant 0 : i32
    %5 = arith.cmpi eq, %arg1, %c0_i32 : i32
    %6 = arith.extui %5 : i1 to i32
    %c0_i32_4 = arith.constant 0 : i32
    %7 = arith.cmpi ne, %6, %c0_i32_4 : i32
    scf.if %7 {
      %c0_7 = arith.constant 0 : index
      %c0_8 = arith.constant 0 : index
      %11 = vector.load %arg3[%c0_7, %c0_8] : memref<8x128xf32, #tpu.memory_space<vmem>>, vector<8x128xf32>
      tpu.vector_store %arg3[%c0_7, %c0_8], %4 {strides = array<i32>} : memref<8x128xf32, #tpu.memory_space<vmem>>, vector<8x128xf32>,
    } else {
    }
    %c0_i32_5 = arith.constant 0 : i32
    %8 = arith.cmpi sgt, %arg1, %c0_i32_5 : i32
    %9 = arith.extui %8 : i1 to i32
    %c0_i32_6 = arith.constant 0 : i32
    %10 = arith.cmpi ne, %9, %c0_i32_6 : i32
    scf.if %10 {
      %c0_7 = arith.constant 0 : index
      %c0_8 = arith.constant 0 : index
      %11 = vector.load %arg3[%c0_7, %c0_8] : memref<8x128xf32, #tpu.memory_space<vmem>>, vector<8x128xf32>
      %12 = arith.maximumf %11, %4 : vector<8x128xf32>
      %c0_9 = arith.constant 0 : index
      %c0_10 = arith.constant 0 : index
      %13 = vector.load %arg3[%c0_9, %c0_10] : memref<8x128xf32, #tpu.memory_space<vmem>>, vector<8x128xf32>
      tpu.vector_store %arg3[%c0_9, %c0_10], %12 {strides = array<i32>} : memref<8x128xf32, #tpu.memory_space<vmem>>, vector<8x128xf32>,
    } else {
    }
    return
  }
  func.func @transform_0(%arg0: i32, %arg1: i32) -> (i32, i32, i32) {
    %c0_i32 = arith.constant 0 : i32
    %c0_i32_0 = arith.constant 0 : i32
    return %arg1, %arg0, %c0_i32 : i32, i32, i32
  }
  func.func @transform_1(%arg0: i32, %arg1: i32) -> (i32, i32) {
    %c0_i32 = arith.constant 0 : i32
    %c0_i32_0 = arith.constant 0 : i32
    return %arg0, %c0_i32 : i32, i32
  }
}

</mosaic_0001>

<bundles_post_ra>
// kernel: tpu_custom_call.1
= control target key start
LH: loop header
LB: loop body
LE: loop exit
PB: predicated region body
PF: predicated region fallthrough
CT: control target
= control target key end

     0   :  { %6 = vsyncpa [#allocation3], 0  ;;  %s122_s0 = inlined_call_operand.hbm [shape: f32[2,8,128], index: 0, kind: input, shape index: {}]   ;;  %s123_s1 = inlined_call_operand.hbm [shape: f32[8,128], index: 1, kind: output, shape index: {}]  }
   0x1   :  { %7 = vsyncpa [#allocation4], 0  ;;  %s102_s6 = smov [#allocation2]  }
   0x2   :  { %s13_s7 = sshll.u32 %s102_s6, 4  ;;  %s14_s7 = int_to_ptr.vmem [resolvable:$true] %s13_s7 }
   0x3   :  { %s66_s8 = scalar_lea.vmem %s14_s7, 256  ;;  %p71_p1 = scmp.lt.s32.totalorder %s14_s7, %s14_s7 }
   0x4   :  { %p67_p0 = scmp.ne.s32.totalorder %s14_s7, %s66_s8  ;;  %p72_p2 = scmp.lt.s32.totalorder %s66_s8, %s66_s8 }
   0x6   :  { %p73_p3 = por %p72_p2, %p71_p1 }
   0x8   :  { %p74_p4 = pnand %p73_p3, %p67_p0 }
   0xa   :  { %77 = shalt.err (!%p74_p4)
}
   0xb   :  { %s103_s9 = smov 128   ;;  %s104_s10 = smov 8  }
   0xc   :  { %19 = dma.hbm_to_vmem [thread:$0]  %s122_s0, 256, %s14_s7, [#allocation3], %s103_s9, %s103_s9, %s104_s10  }
   0xd   :  { %98 = dma.done.wait [#allocation3], 256  }
   0xe   :  { %99 = vsyncadd [#allocation3], 4294967040  ;;  %s105_s13 = smov [#allocation5]   ;;  %v23_v0 = vld [vmem:[#allocation2] sm:$0xff]  ;;  %v25_v1 = vld [vmem:[#allocation2 + $0x8] sm:$0xff] }
   0xf   :  { %s45_s14 = sshll.u32 %s105_s13, 4  ;;  %v26_v2 = vmax.f32 %v23_v0, %v25_v1  ;;  %s46_s14 = int_to_ptr.vmem [resolvable:$true] %s45_s14 }
  0x10   :  { %s78_s15 = scalar_lea.vmem %s46_s14, 128  ;;  %p83_p6 = scmp.lt.s32.totalorder %s46_s14, %s46_s14 }
  0x11   :  { %31 = vst [vmem:[#allocation5] sm:$0xff] %v26_v2  ;;  %p79_p5 = scmp.ne.s32.totalorder %s46_s14, %s78_s15  ;;  %p84_p7 = scmp.lt.s32.totalorder %s78_s15, %s78_s15 }
  0x13   :  { %p85_p8 = por %p84_p7, %p83_p6 }
  0x15   :  { %p86_p9 = pnand %p85_p8, %p79_p5 }
  0x17   :  { %89 = shalt.err (!%p86_p9)
}
  0x18   :  { %48 = dma.vmem_to_hbm [thread:$0]  %s46_s14, 128, %s123_s1, [#allocation4]  }
  0x19   :  { %100 = dma.done.wait [#allocation4], 128  }
  0x1a   :  { %101 = vsyncadd [#allocation4], 4294967168 }
  0x1b   :  { %52 = vsyncpa [#allocation3], 1 }
  0x1c   :  { %53 = vsyncpa [#allocation4], 1 }

</bundles_post_ra>
